<compile_context>
chip_gen: v7x
topology: tpu7x:2x2x1
jax: 0.10.0
libtpu: 0.0.40
codegen_flags: <defaults>
</compile_context>

<pallas_src>
import math
import jax
import jax.numpy as jnp
from jax.experimental import pallas as pl
from jax.experimental.pallas import tpu as pltpu  # noqa: F401  (kept for TPU-specific params if needed)

# ---- model hyper-params (small, consistent with the module) ----
BATCH = 2
SEQ = 8
EMBED = 32
HEADS = 4
HEAD_DIM = EMBED // HEADS
VF = HEADS * EMBED  # 128 lanes of folded V


def self_attention_kernel(vkq_ref, mask_ref, w_ref, bo_ref, out_ref):
    x = vkq_ref[...]                      # (N*S, 3E)  = [v | k | q] on lanes
    mask = mask_ref[...]                  # (N*S, N*S) additive (0 / -1e20), batch-block-diagonal

    # One fused MXU op: V@Wv^T folded with Wo, K@Wk^T, (Q@Wq^T)/sqrt(E).
    proj = jnp.dot(x, w_ref[...], preferred_element_type=jnp.float32)   # (N*S, H*E + 2E)
    v_fold = proj[:, :VF]                 # (N*S, H*E)  lanes 0..127
    k_p = proj[:, VF:VF + EMBED]          # (N*S, E)
    q_p = proj[:, VF + EMBED:]            # (N*S, E), already scaled by 1/sqrt(E)

    acc = jnp.broadcast_to(bo_ref[...], out_ref.shape).astype(jnp.float32)  # init with fc_out bias
    for h in range(HEADS):                # static loop, HEADS = 4
        dsl = slice(h * HEAD_DIM, (h + 1) * HEAD_DIM)
        qh = q_p[:, dsl]                  # (N*S, D)
        kh = k_p[:, dsl]                  # (N*S, D)
        # q @ k^T without materializing a transpose (contract last dims on the MXU).
        logits = jax.lax.dot_general(
            qh, kh, (((1,), (1,)), ((), ())), preferred_element_type=jnp.float32)  # (N*S, N*S)
        logits = logits + mask
        logits = logits - jnp.max(logits, axis=-1, keepdims=True)
        p = jnp.exp(logits)
        denom = jnp.sum(p, axis=-1, keepdims=True)
        attn = p * pl.reciprocal(denom, approx=True)
        vh = v_fold[:, h * EMBED:(h + 1) * EMBED]   # (N*S, E): V head h already times Wv^T @ Wo_h^T
        acc = acc + jnp.dot(attn, vh, preferred_element_type=jnp.float32)

    out_ref[...] = acc.astype(out_ref.dtype)


def make_kernel_params(Wv, Wk, Wq, Wo, bo):
    """Host-side weight fusion (torch Linear stores (out, in); kernel wants (in, out))."""
    D, E, H = HEAD_DIM, EMBED, HEADS
    wo_t = Wo.T                                        # (E, E)
    wv_t = Wv.T                                        # (D, D)
    wk_big = jax.scipy.linalg.block_diag(*([Wk.T] * H))                        # (E, E)
    wq_big = jax.scipy.linalg.block_diag(*([Wq.T] * H)) * (1.0 / math.sqrt(E)) # (E, E), pre-scaled

    # Fold Wo into V: per head, (Wv^T) @ Wo^T[h*D:(h+1)*D, :]  -> (D, E), placed block-wise.
    w_vo = jnp.zeros((E, H * E), jnp.float32)
    for h in range(H):
        blk = wv_t @ wo_t[h * D:(h + 1) * D, :]        # (D, E)
        w_vo = w_vo.at[h * D:(h + 1) * D, h * E:(h + 1) * E].set(blk)

    w_fused = jnp.zeros((3 * E, H * E + 2 * E), jnp.float32)
    w_fused = w_fused.at[0:E, 0:H * E].set(w_vo)                         # v rows -> folded V cols
    w_fused = w_fused.at[E:2 * E, H * E:H * E + E].set(wk_big)           # k rows -> K cols
    w_fused = w_fused.at[2 * E:3 * E, H * E + E:H * E + 2 * E].set(wq_big)  # q rows -> Q cols
    return dict(w_fused=w_fused, bo=bo.reshape(1, E).astype(jnp.float32))


def self_attention(value, key, query, mask, params):
    """value/key/query: (N, S, E) f32; mask: (N, S, S) f32 (0 => masked). Returns (N, S, E)."""
    N, S, E = query.shape
    # Fold batch into rows; concatenate v|k|q along lanes -> one input stream.
    vkq = jnp.concatenate([value, key, query], axis=-1).reshape(N * S, 3 * E).astype(jnp.float32)
    # Additive mask, block-diagonal over batch (cross-batch entries masked out).
    keep = jax.scipy.linalg.block_diag(*[mask[n] for n in range(N)])     # (N*S, N*S)
    add_mask = jnp.where(keep == 0, jnp.float32(-1e20), jnp.float32(0.0))

    out = pl.pallas_call(
        self_attention_kernel,
        out_shape=jax.ShapeDtypeStruct((N * S, E), jnp.float32),
    )(vkq, add_mask, params["w_fused"], params["bo"])
    return out.reshape(N, S, E)


# -------------------- pure-JAX reference (mirrors the torch forward) --------------------
def reference(value, key, query, mask, Wv, Wk, Wq, Wo, bo):
    N, S, E = query.shape
    v = value.reshape(N, S, HEADS, HEAD_DIM) @ Wv.T
    k = key.reshape(N, S, HEADS, HEAD_DIM) @ Wk.T
    q = query.reshape(N, S, HEADS, HEAD_DIM) @ Wq.T
    energy = jnp.einsum("nqhd,nkhd->nhqk", q, k)
    energy = jnp.where(mask[:, None, :, :] == 0, -1e20, energy)
    attn = jax.nn.softmax(energy / math.sqrt(E), axis=3)
    out = jnp.einsum("nhql,nlhd->nqhd", attn, v).reshape(N, S, E)
    return out @ Wo.T + bo


if __name__ == "__main__":
    rng = jax.random.PRNGKey(0)
    ks = jax.random.split(rng, 12)

    # torch-style weights: Linear stores (out, in)
    Wv = jax.random.normal(ks[0], (HEAD_DIM, HEAD_DIM), jnp.float32) * 0.2
    Wk = jax.random.normal(ks[1], (HEAD_DIM, HEAD_DIM), jnp.float32) * 0.2
    Wq = jax.random.normal(ks[2], (HEAD_DIM, HEAD_DIM), jnp.float32) * 0.2
    Wo = jax.random.normal(ks[3], (EMBED, EMBED), jnp.float32) * 0.1
    bo = jax.random.normal(ks[4], (EMBED,), jnp.float32) * 0.05

    value = jax.random.normal(ks[5], (BATCH, SEQ, EMBED), jnp.float32)
    key_in = jax.random.normal(ks[6], (BATCH, SEQ, EMBED), jnp.float32)
    query = jax.random.normal(ks[7], (BATCH, SEQ, EMBED), jnp.float32)
    # causal mask (0 => masked), shared across heads (masked_fill semantics)
    mask = jnp.broadcast_to(jnp.tril(jnp.ones((SEQ, SEQ), jnp.float32)), (BATCH, SEQ, SEQ))

    params = make_kernel_params(Wv, Wk, Wq, Wo, bo)

    out = self_attention(value, key_in, query, mask, params)
    out = jax.block_until_ready(out)

    ref = reference(value, key_in, query, mask, Wv, Wk, Wq, Wo, bo)
    assert out.shape == (BATCH, SEQ, EMBED)
    # tolerance slightly loosened for the EUP approximate reciprocal in the softmax
    assert jnp.allclose(out, ref, atol=2e-3, rtol=2e-3), "mismatch vs reference"
    print("KERNEL_OK")
</pallas_src>

<mosaic_0001>
module attributes {stable_mosaic.version = 11 : i64} {
  func.func @self_attention_kernel(%arg0: memref<16x96xf32, #tpu.memory_space<vmem>>, %arg1: memref<16x16xf32, #tpu.memory_space<vmem>>, %arg2: memref<96x192xf32, #tpu.memory_space<vmem>>, %arg3: memref<1x32xf32, #tpu.memory_space<vmem>>, %arg4: memref<16x32xf32, #tpu.memory_space<vmem>>) attributes {dimension_semantics = [], scalar_prefetch = 0 : i64, scratch_operands = 0 : i64, tpu.core_type = #tpu.core_type<tc>} {
    %c0 = arith.constant 0 : index
    %c0_0 = arith.constant 0 : index
    %0 = vector.load %arg0[%c0, %c0_0] : memref<16x96xf32, #tpu.memory_space<vmem>>, vector<16x96xf32>
    %c0_1 = arith.constant 0 : index
    %c0_2 = arith.constant 0 : index
    %1 = vector.load %arg1[%c0_1, %c0_2] : memref<16x16xf32, #tpu.memory_space<vmem>>, vector<16x16xf32>
    %c0_3 = arith.constant 0 : index
    %c0_4 = arith.constant 0 : index
    %2 = vector.load %arg2[%c0_3, %c0_4] : memref<96x192xf32, #tpu.memory_space<vmem>>, vector<96x192xf32>
    %cst = arith.constant dense<0.000000e+00> : vector<16x192xf32>
    %3 = tpu.matmul %0, %2, %cst {dimension_numbers = #tpu.dot_dimension_numbers<[1], [0], [0], [1], [0, 0, 1, 1], [], []>} : vector<16x96xf32>, vector<96x192xf32>, vector<16x192xf32> -> vector<16x192xf32>
    %4 = vector.extract_strided_slice %3 {offsets = [0, 0], sizes = [16, 128], strides = [1, 1]} : vector<16x192xf32> to vector<16x128xf32>
    %5 = vector.extract_strided_slice %3 {offsets = [0, 128], sizes = [16, 32], strides = [1, 1]} : vector<16x192xf32> to vector<16x32xf32>
    %6 = vector.extract_strided_slice %3 {offsets = [0, 160], sizes = [16, 32], strides = [1, 1]} : vector<16x192xf32> to vector<16x32xf32>
    %c0_5 = arith.constant 0 : index
    %c0_6 = arith.constant 0 : index
    %7 = vector.load %arg3[%c0_5, %c0_6] : memref<1x32xf32, #tpu.memory_space<vmem>>, vector<1x32xf32>
    %8 = vector.shape_cast %7 : vector<1x32xf32> to vector<1x32xf32>
    %9 = vector.broadcast %8 : vector<1x32xf32> to vector<16x32xf32>
    %10 = vector.extract_strided_slice %6 {offsets = [0, 0], sizes = [16, 8], strides = [1, 1]} : vector<16x32xf32> to vector<16x8xf32>
    %11 = vector.extract_strided_slice %5 {offsets = [0, 0], sizes = [16, 8], strides = [1, 1]} : vector<16x32xf32> to vector<16x8xf32>
    %cst_7 = arith.constant dense<0.000000e+00> : vector<16x16xf32>
    %12 = tpu.matmul %10, %11, %cst_7 {dimension_numbers = #tpu.dot_dimension_numbers<[1], [1], [0], [0], [0, 0, 1, 0], [], []>} : vector<16x8xf32>, vector<16x8xf32>, vector<16x16xf32> -> vector<16x16xf32>
    %13 = arith.addf %12, %1 : vector<16x16xf32>
    %cst_8 = arith.constant dense<0xFF800000> : vector<16xf32>
    %14 = vector.multi_reduction <maximumf>, %13, %cst_8 [1] : vector<16x16xf32> to vector<16xf32>
    %15 = vector.shape_cast %14 : vector<16xf32> to vector<16x1xf32>
    %16 = vector.broadcast %15 : vector<16x1xf32> to vector<16x16xf32>
    %17 = arith.subf %13, %16 : vector<16x16xf32>
    %18 = math.exp %17 : vector<16x16xf32>
    %cst_9 = arith.constant dense<0.000000e+00> : vector<16xf32>
    %19 = vector.multi_reduction <add>, %18, %cst_9 [1] : vector<16x16xf32> to vector<16xf32>
    %20 = vector.shape_cast %19 : vector<16xf32> to vector<16x1xf32>
    %21 = tpu.reciprocal %20 {approx = true} : vector<16x1xf32> -> vector<16x1xf32>
    %22 = vector.broadcast %21 : vector<16x1xf32> to vector<16x16xf32>
    %23 = arith.mulf %18, %22 : vector<16x16xf32>
    %24 = vector.extract_strided_slice %4 {offsets = [0, 0], sizes = [16, 32], strides = [1, 1]} : vector<16x128xf32> to vector<16x32xf32>
    %cst_10 = arith.constant dense<0.000000e+00> : vector<16x32xf32>
    %25 = tpu.matmul %23, %24, %cst_10 {dimension_numbers = #tpu.dot_dimension_numbers<[1], [0], [0], [1], [0, 0, 1, 1], [], []>} : vector<16x16xf32>, vector<16x32xf32>, vector<16x32xf32> -> vector<16x32xf32>
    %26 = arith.addf %9, %25 : vector<16x32xf32>
    %27 = vector.extract_strided_slice %6 {offsets = [0, 8], sizes = [16, 8], strides = [1, 1]} : vector<16x32xf32> to vector<16x8xf32>
    %28 = vector.extract_strided_slice %5 {offsets = [0, 8], sizes = [16, 8], strides = [1, 1]} : vector<16x32xf32> to vector<16x8xf32>
    %cst_11 = arith.constant dense<0.000000e+00> : vector<16x16xf32>
    %29 = tpu.matmul %27, %28, %cst_11 {dimension_numbers = #tpu.dot_dimension_numbers<[1], [1], [0], [0], [0, 0, 1, 0], [], []>} : vector<16x8xf32>, vector<16x8xf32>, vector<16x16xf32> -> vector<16x16xf32>
    %30 = arith.addf %29, %1 : vector<16x16xf32>
    %cst_12 = arith.constant dense<0xFF800000> : vector<16xf32>
    %31 = vector.multi_reduction <maximumf>, %30, %cst_12 [1] : vector<16x16xf32> to vector<16xf32>
    %32 = vector.shape_cast %31 : vector<16xf32> to vector<16x1xf32>
    %33 = vector.broadcast %32 : vector<16x1xf32> to vector<16x16xf32>
    %34 = arith.subf %30, %33 : vector<16x16xf32>
    %35 = math.exp %34 : vector<16x16xf32>
    %cst_13 = arith.constant dense<0.000000e+00> : vector<16xf32>
    %36 = vector.multi_reduction <add>, %35, %cst_13 [1] : vector<16x16xf32> to vector<16xf32>
    %37 = vector.shape_cast %36 : vector<16xf32> to vector<16x1xf32>
    %38 = tpu.reciprocal %37 {approx = true} : vector<16x1xf32> -> vector<16x1xf32>
    %39 = vector.broadcast %38 : vector<16x1xf32> to vector<16x16xf32>
    %40 = arith.mulf %35, %39 : vector<16x16xf32>
    %41 = vector.extract_strided_slice %4 {offsets = [0, 32], sizes = [16, 32], strides = [1, 1]} : vector<16x128xf32> to vector<16x32xf32>
    %cst_14 = arith.constant dense<0.000000e+00> : vector<16x32xf32>
    %42 = tpu.matmul %40, %41, %cst_14 {dimension_numbers = #tpu.dot_dimension_numbers<[1], [0], [0], [1], [0, 0, 1, 1], [], []>} : vector<16x16xf32>, vector<16x32xf32>, vector<16x32xf32> -> vector<16x32xf32>
    %43 = arith.addf %26, %42 : vector<16x32xf32>
    %44 = vector.extract_strided_slice %6 {offsets = [0, 16], sizes = [16, 8], strides = [1, 1]} : vector<16x32xf32> to vector<16x8xf32>
    %45 = vector.extract_strided_slice %5 {offsets = [0, 16], sizes = [16, 8], strides = [1, 1]} : vector<16x32xf32> to vector<16x8xf32>
    %cst_15 = arith.constant dense<0.000000e+00> : vector<16x16xf32>
    %46 = tpu.matmul %44, %45, %cst_15 {dimension_numbers = #tpu.dot_dimension_numbers<[1], [1], [0], [0], [0, 0, 1, 0], [], []>} : vector<16x8xf32>, vector<16x8xf32>, vector<16x16xf32> -> vector<16x16xf32>
    %47 = arith.addf %46, %1 : vector<16x16xf32>
    %cst_16 = arith.constant dense<0xFF800000> : vector<16xf32>
    %48 = vector.multi_reduction <maximumf>, %47, %cst_16 [1] : vector<16x16xf32> to vector<16xf32>
    %49 = vector.shape_cast %48 : vector<16xf32> to vector<16x1xf32>
    %50 = vector.broadcast %49 : vector<16x1xf32> to vector<16x16xf32>
    %51 = arith.subf %47, %50 : vector<16x16xf32>
    %52 = math.exp %51 : vector<16x16xf32>
    %cst_17 = arith.constant dense<0.000000e+00> : vector<16xf32>
    %53 = vector.multi_reduction <add>, %52, %cst_17 [1] : vector<16x16xf32> to vector<16xf32>
    %54 = vector.shape_cast %53 : vector<16xf32> to vector<16x1xf32>
    %55 = tpu.reciprocal %54 {approx = true} : vector<16x1xf32> -> vector<16x1xf32>
    %56 = vector.broadcast %55 : vector<16x1xf32> to vector<16x16xf32>
    %57 = arith.mulf %52, %56 : vector<16x16xf32>
    %58 = vector.extract_strided_slice %4 {offsets = [0, 64], sizes = [16, 32], strides = [1, 1]} : vector<16x128xf32> to vector<16x32xf32>
    %cst_18 = arith.constant dense<0.000000e+00> : vector<16x32xf32>
    %59 = tpu.matmul %57, %58, %cst_18 {dimension_numbers = #tpu.dot_dimension_numbers<[1], [0], [0], [1], [0, 0, 1, 1], [], []>} : vector<16x16xf32>, vector<16x32xf32>, vector<16x32xf32> -> vector<16x32xf32>
    %60 = arith.addf %43, %59 : vector<16x32xf32>
    %61 = vector.extract_strided_slice %6 {offsets = [0, 24], sizes = [16, 8], strides = [1, 1]} : vector<16x32xf32> to vector<16x8xf32>
    %62 = vector.extract_strided_slice %5 {offsets = [0, 24], sizes = [16, 8], strides = [1, 1]} : vector<16x32xf32> to vector<16x8xf32>
    %cst_19 = arith.constant dense<0.000000e+00> : vector<16x16xf32>
    %63 = tpu.matmul %61, %62, %cst_19 {dimension_numbers = #tpu.dot_dimension_numbers<[1], [1], [0], [0], [0, 0, 1, 0], [], []>} : vector<16x8xf32>, vector<16x8xf32>, vector<16x16xf32> -> vector<16x16xf32>
    %64 = arith.addf %63, %1 : vector<16x16xf32>
    %cst_20 = arith.constant dense<0xFF800000> : vector<16xf32>
    %65 = vector.multi_reduction <maximumf>, %64, %cst_20 [1] : vector<16x16xf32> to vector<16xf32>
    %66 = vector.shape_cast %65 : vector<16xf32> to vector<16x1xf32>
    %67 = vector.broadcast %66 : vector<16x1xf32> to vector<16x16xf32>
    %68 = arith.subf %64, %67 : vector<16x16xf32>
    %69 = math.exp %68 : vector<16x16xf32>
    %cst_21 = arith.constant dense<0.000000e+00> : vector<16xf32>
    %70 = vector.multi_reduction <add>, %69, %cst_21 [1] : vector<16x16xf32> to vector<16xf32>
    %71 = vector.shape_cast %70 : vector<16xf32> to vector<16x1xf32>
    %72 = tpu.reciprocal %71 {approx = true} : vector<16x1xf32> -> vector<16x1xf32>
    %73 = vector.broadcast %72 : vector<16x1xf32> to vector<16x16xf32>
    %74 = arith.mulf %69, %73 : vector<16x16xf32>
    %75 = vector.extract_strided_slice %4 {offsets = [0, 96], sizes = [16, 32], strides = [1, 1]} : vector<16x128xf32> to vector<16x32xf32>
    %cst_22 = arith.constant dense<0.000000e+00> : vector<16x32xf32>
    %76 = tpu.matmul %74, %75, %cst_22 {dimension_numbers = #tpu.dot_dimension_numbers<[1], [0], [0], [1], [0, 0, 1, 1], [], []>} : vector<16x16xf32>, vector<16x32xf32>, vector<16x32xf32> -> vector<16x32xf32>
    %77 = arith.addf %60, %76 : vector<16x32xf32>
    %c0_23 = arith.constant 0 : index
    %c0_24 = arith.constant 0 : index
    %78 = vector.load %arg4[%c0_23, %c0_24] : memref<16x32xf32, #tpu.memory_space<vmem>>, vector<16x32xf32>
    tpu.vector_store %arg4[%c0_23, %c0_24], %77 {strides = array<i32>} : memref<16x32xf32, #tpu.memory_space<vmem>>, vector<16x32xf32>,
    return
  }
}

</mosaic_0001>

<bundles_post_ra>
// kernel: tpu_custom_call.1
= control target key start
LH: loop header
LB: loop body
LE: loop exit
PB: predicated region body
PF: predicated region fallthrough
CT: control target
= control target key end

     0   :  { %9 = vsyncpa [#allocation3], 0  ;;  %s1575_s0 = inlined_call_operand.hbm [shape: f32[16,96], index: 0, kind: input, shape index: {}]   ;;  %s1576_s1 = inlined_call_operand.hbm [shape: f32[16,16], index: 1, kind: input, shape index: {}]   ;;  %s1577_s2 = inlined_call_operand.hbm [shape: f32[96,192], index: 2, kind: input, shape index: {}]   ;;  %s1578_s3 = inlined_call_operand.vmem [shape: f32[1,32], index: 3, kind: input, shape index: {}]   ;;  %s1579_s4 = inlined_call_operand.hbm [shape: f32[16,32], index: 4, kind: output, shape index: {}]  }
   0x1   :  { %10 = vsyncpa [#allocation6], 0 }
   0x2   :  { %11 = vsyncpa [#allocation4], 0  ;;  %s1364_s15 = smov [#allocation5]   ;;  %s1365_s17 = smov [#allocation2]  }
   0x3   :  { %s29_s16 = sshll.u32 %s1364_s15, 4  ;;  %s17_s18 = sshll.u32 %s1365_s17, 4  ;;  %s30_s16 = int_to_ptr.vmem [resolvable:$true] %s29_s16  ;;  %s1407_s18 = int_to_ptr.vmem [resolvable:$true] %s17_s18 }
   0x4   :  { %s1270_s21 = scalar_lea.hbm %s1576_s1, 256 }
   0x5   :  { %p1271_p0 = scmp.ne.s32.totalorder %s1576_s1, %s1270_s21  ;;  %p1274_p1 = scmp.lt.u32.totalorder %s1270_s21, %s1576_s1 }
   0x7   :  { %p1276_p2 = pnand %p1274_p1, %p1271_p0 }
   0x9   :  { %1279 = shalt.err (!%p1276_p2)
}
   0xa   :  { %s1280_s26 = scalar_lea.vmem %s30_s16, 256  ;;  %p1285_p4 = scmp.lt.s32.totalorder %s30_s16, %s30_s16 }
   0xb   :  { %p1281_p3 = scmp.ne.s32.totalorder %s30_s16, %s1280_s26  ;;  %p1286_p5 = scmp.lt.s32.totalorder %s1280_s26, %s1280_s26 }
   0xd   :  { %p1287_p6 = por %p1286_p5, %p1285_p4 }
   0xf   :  { %p1288_p7 = pnand %p1287_p6, %p1281_p3 }
  0x11   :  { %1291 = shalt.err (!%p1288_p7)
}
  0x12   :  { %s1366_s27 = smov 128   ;;  %s1367_s28 = smov 8  }
  0x13   :  { %35 = dma.hbm_to_vmem [thread:$0]  %s1576_s1, 256, %s30_s16, [#allocation6], %s1366_s27, %s1366_s27, %s1367_s28  }
  0x14   :  { %s1292_s7 = scalar_lea.hbm %s1575_s0, 256 }
  0x15   :  { %p1293_p8 = scmp.ne.s32.totalorder %s1575_s0, %s1292_s7  ;;  %p1296_p9 = scmp.lt.u32.totalorder %s1292_s7, %s1575_s0 }
  0x17   :  { %p1298_p10 = pnand %p1296_p9, %p1293_p8 }
  0x19   :  { %1301 = shalt.err (!%p1298_p10)
}
  0x1a   :  { %s1302_s12 = scalar_lea.vmem %s1407_s18, 256  ;;  %p1307_p12 = scmp.lt.s32.totalorder %s1407_s18, %s1407_s18 }
  0x1b   :  { %p1303_p11 = scmp.ne.s32.totalorder %s1407_s18, %s1302_s12  ;;  %p1308_p13 = scmp.lt.s32.totalorder %s1302_s12, %s1302_s12 }
  0x1d   :  { %p1309_p0 = por %p1308_p13, %p1307_p12 }
  0x1f   :  { %p1310_p1 = pnand %p1309_p0, %p1303_p11 }
  0x21   :  { %1313 = shalt.err (!%p1310_p1)
}
  0x22   :  { %23 = dma.hbm_to_vmem [thread:$0]  %s1575_s0, 256, %s1407_s18, [#allocation3], %s1366_s27, %s1366_s27, %s1367_s28  }
  0x23   :  { %s1368_s14 = smov [#allocation7]   ;;  %s1314_s19 = scalar_lea.hbm %s1577_s2, 3072 }
  0x24   :  { %s41_s15 = sshll.u32 %s1368_s14, 4  ;;  %p1315_p2 = scmp.ne.s32.totalorder %s1577_s2, %s1314_s19  ;;  %s42_s15 = int_to_ptr.vmem [resolvable:$true] %s41_s15 }
  0x25   :  { %p1318_p3 = scmp.lt.u32.totalorder %s1314_s19, %s1577_s2 }
  0x27   :  { %p1320_p4 = pnand %p1318_p3, %p1315_p2 }
  0x29   :  { %1323 = shalt.err (!%p1320_p4)
}
  0x2a   :  { %s1324_s24 = scalar_lea.vmem %s42_s15, 3072  ;;  %p1329_p6 = scmp.lt.s32.totalorder %s42_s15, %s42_s15 }
  0x2b   :  { %p1325_p5 = scmp.ne.s32.totalorder %s42_s15, %s1324_s24  ;;  %p1330_p7 = scmp.lt.s32.totalorder %s1324_s24, %s1324_s24 }
  0x2d   :  { %p1331_p8 = por %p1330_p7, %p1329_p6 }
  0x2f   :  { %p1332_p9 = pnand %p1331_p8, %p1325_p5 }
  0x31   :  { %1335 = shalt.err (!%p1332_p9)
}
  0x32   :  { %s1369_s0 = smov 256   ;;  %s1370_s18 = smov 16  }
  0x33   :  { %47 = dma.hbm_to_vmem [thread:$0]  %s1577_s2, 3072, %s42_s15, [#allocation6], %s1369_s0, %s1369_s0, %s1370_s18  }
  0x34   :  { %1358 = dma.done.wait [#allocation3], 256  }
  0x35   :  { %1359 = vsyncadd [#allocation3], 4294967040 }
  0x36   :  { %1360 = dma.done.wait [#allocation6], 3328  }
  0x37   :  { %1361 = vsyncadd [#allocation6], 4294963968  ;;  %v1371_v0 = vmov 0.0   ;;  %v64_v1 = vld [vmem:[#allocation7 + $0x8] sm:$0xff]  ;;  %v66_v2 = vld [vmem:[#allocation7 + $0x18] sm:$0xff]  ;;  %vm87_vm0 = vcmask 785408  }
  0x38   :  { %158 = vmatprep.mubr.f32.mxu0 %v1371_v0  ;;  %v63_v3 = vld [vmem:[#allocation7] sm:$0xff]  ;;  %v1118_v4 = vpack.c.bf16 %v66_v2, %v64_v1  ;;  %v65_v5 = vld [vmem:[#allocation7 + $0x10] sm:$0xff]  ;;  %v68_v6 = vld [vmem:[#allocation7 + $0x28] sm:$0xff]  ;;  %s1372_s2 = smov 96   ;;  %vm184_vm1 = vcmask 64512   ;;  %vm268_vm3 = vcmask 130048  }
  0x39   :  { %v70_v7 = vld [vmem:[#allocation7 + $0x38] sm:$0xff]  ;;  %v1120_v8 = vpack.c.bf16 %v65_v5, %v63_v3  ;;  %v67_v10 = vld [vmem:[#allocation7 + $0x20] sm:$0xff]  ;;  %v69_v11 = vld [vmem:[#allocation7 + $0x30] sm:$0xff]  ;;  %s1373_s29 = smov 120   ;;  %s1374_s30 = smov 88   ;;  %vm982_vm4 = vcmask 261120  }
  0x3a   :  { %v1122_v9 = vpack.c.bf16 %v70_v7, %v68_v6  ;;  %v72_v12 = vld [vmem:[#allocation7 + $0x48] sm:$0xff]  ;;  %1119 = vmatprep.subr.bf16.mxu0 %v1118_v4  ;;  %v74_v13 = vld [vmem:[#allocation7 + $0x58] sm:$0xff]  ;;  %v1124_v14 = vpack.c.bf16 %v69_v11, %v67_v10  ;;  %v71_v16 = vld [vmem:[#allocation7 + $0x40] sm:$0xff]  ;;  %s1375_s5 = smov 104   ;;  %s1376_s6 = smov 112  }
  0x3b   :  { %1121 = vmatpush1.bf16.msra.mxu0 %v1120_v8  ;;  %v1126_v15 = vpack.c.bf16 %v74_v13, %v72_v12  ;;  %v73_v17 = vld [vmem:[#allocation7 + $0x50] sm:$0xff]  ;;  %v76_v18 = vld [vmem:[#allocation7 + $0x68] sm:$0xff]  ;;  %v78_v19 = vld [vmem:[#allocation7 + $0x78] sm:$0xff]  ;;  %s1377_s7 = smov 80   ;;  %s1378_s8 = smov 72  }
  0x3c   :  { %1123 = vmatprep.subr.bf16.mxu0 %v1122_v9  ;;  %v1128_v20 = vpack.c.bf16 %v73_v17, %v71_v16  ;;  %v1130_v21 = vpack.c.bf16 %v78_v19, %v76_v18  ;;  %v75_v22 = vld [vmem:[#allocation7 + $0x60] sm:$0xff]  ;;  %v77_v23 = vld [vmem:[#allocation7 + $0x70] sm:$0xff]  ;;  %v80_v24 = vld [vmem:[#allocation7 + $0x88] sm:$0xff]  ;;  %s1379_s9 = smov 32   ;;  %s1380_s10 = smov 64  }
  0x3d   :  { %v82_v25 = vld [vmem:[#allocation7 + $0x98] sm:$0xff]  ;;  %v1132_v26 = vpack.c.bf16 %v77_v23, %v75_v22  ;;  %v79_v28 = vld [vmem:[#allocation7 + $0x80] sm:$0xff]  ;;  %v81_v29 = vld [vmem:[#allocation7 + $0x90] sm:$0xff]  ;;  %s1381_s1 = smov [#allocation8]  }
  0x3e   :  { %v1134_v27 = vpack.c.bf16 %v82_v25, %v80_v24  ;;  %v84_v30 = vld [vmem:[#allocation7 + $0xa8] sm:$0xff]  ;;  %v86_v31 = vld [vmem:[#allocation7 + $0xb8] sm:$0xff]  ;;  %v1136_v32 = vpack.c.bf16 %v81_v29, %v79_v28  ;;  %v83_v34 = vld [vmem:[#allocation7 + $0xa0] sm:$0xff]  ;;  %s990_s13 = sshll.u32 %s1381_s1, 4  ;;  %s991_s13 = int_to_ptr.vmem [resolvable:$true] %s990_s13 }
  0x3f   :  { %1125 = vmatpush1.bf16.msra.mxu0 %v1124_v14  ;;  %v1138_v33 = vpack.c.bf16 %v86_v31, %v84_v30  ;;  %v85_v35 = vld [vmem:[#allocation7 + $0xb0] sm:$0xff]  ;;  %v59_v37 = vld [vmem:[#allocation2] sm:$0xff]  ;;  %v60_v38 = vld [vmem:[#allocation2 + $0x8] sm:$0xff]  ;;  %s1336_s14 = scalar_lea.vmem %s991_s13, 256  ;;  %p1341_p11 = scmp.lt.s32.totalorder %s991_s13, %s991_s13 }
  0x40   :  { %1127 = vmatprep.subr.bf16.mxu0 %v1126_v15  ;;  %v1140_v36 = vpack.c.bf16 %v85_v35, %v83_v34  ;;  %vm1464_vm2 = vmpackc.low %vm184_vm1, %vm184_vm1  ;;  %v1484_v50 = vld [vmem:[#allocation5] sm:$0xff]  ;;  %v1486_v52 = vld [vmem:[#allocation5 + $0x8] sm:$0xff]  ;;  %p1337_p10 = scmp.ne.s32.totalorder %s991_s13, %s1336_s14  ;;  %p1342_p12 = scmp.lt.s32.totalorder %s1336_s14, %s1336_s14 }
  0x42   :  { %p1343_p13 = por %p1342_p12, %p1341_p11 }
  0x43   :  { %1129 = vmatpush1.bf16.msra.mxu0 %v1128_v20 }
  0x44   :  { %1131 = vmatprep.subr.bf16.mxu0 %v1130_v21  ;;  %p1344_p0 = pnand %p1343_p13, %p1337_p10 }
  0x47   :  { %1133 = vmatpush1.bf16.msra.mxu0 %v1132_v26 }
  0x48   :  { %1135 = vmatprep.subr.bf16.mxu0 %v1134_v27 }
  0x4b   :  { %1137 = vmatpush1.bf16.msra.mxu0 %v1136_v32 }
  0x4c   :  { %1139 = vmatprep.subr.bf16.mxu0 %v1138_v33 }
  0x4f   :  { %1141 = vmatpush1.bf16.msra.mxu0 %v1140_v36 }
  0x52   :  { %1003 = vmatmul.mubr.msk.f32.vlgmr.msra.gmra.mrb[0].mxu0 %vm87_vm0, %v59_v37 }
  0x53   :  { %164 = vmatprep.mubr.f32.mxu0 %v1371_v0 }
  0x56   :  { %1004 = vmatmul.mubr.msk.f32.gmra.mrb[2].mxu0 %vm87_vm0, %v60_v38 }
 0x125   :  { %v160_v39 = vpop.f32.mrb[0].mxu0 }
 0x126   :  { %v1456_v40 = vpop.f32.mrb[1].mxu0 }
 0x127   :  { %180 = vrot.lane.b32.xlu0 %v1456_v40, %s1372_s2 }
 0x129   :  { %v166_v41 = vpop.f32.mrb[2].mxu0 }
 0x12a   :  { %v1460_v42 = vpop.f32.mrb[3].mxu0  ;;  %v1148_v44 = vpack.c.bf16 %v166_v41, %v160_v39  ;;  %v1468_v45 = vpack.i.bf16 %v166_v41, %v160_v39 }
 0x12b   :  { %182 = vrot.lane.b32.xlu0 %v1460_v42, %s1372_s2  ;;  %v1142_v46 = vpack.c.bf16 %v1460_v42, %v1456_v40  ;;  %v1476_v47 = vpack.i.bf16 %v1460_v42, %v1456_v40 }
 0x12d   :  { %1144 = vmatprep.subr.msk.bf16.mxu1 %vm1464_vm2, %v1142_v46 }
 0x12e   :  { %1147 = vmatpush3.bf16.xpose.msk.msra.mxu1 %vm1464_vm2, %v1142_v46 }
 0x12f   :  { %1149 = vmatprep.subr.bf16.mxu1 %v1148_v44 }
 0x199   :  { %v181_v48 = vpop.permute.xlu0 %180 }
 0x19a   :  { %1066 = vmatprep.mubr.msk.f32.mxu1 %vm184_vm1, %v181_v48 }
 0x19d   :  { %v183_v49 = vpop.permute.xlu0 %182 }
 0x19e   :  { %1067 = vmatmul.mubr.msk.f32.vlgmr.msra.gmra.mrb[0].mxu1 %vm184_vm1, %v183_v49 }
 0x19f   :  { %1151 = vmatpush3.bf16.msra.mxu1 %v1148_v44 }
 0x271   :  { %v1068_v51 = vpop.f32.mrb[0].mxu1 }
 0x272   :  { %v259_v53 = vpop.f32.mrb[1].mxu1  ;;  %v265_v55 = vadd.f32 %v1068_v51, %v1486_v52 }
 0x273   :  { %v260_v54 = vadd.f32 %v259_v53, %v1484_v50 }
 0x274   :  { %v272_v57 = vsel %vm268_vm3, %v265_v55, -inf }
 0x275   :  { %v269_v56 = vsel %vm268_vm3, %v260_v54, -inf }
 0x276   :  { %270 = vmax.xlane.f32.xlu1 %v269_v56 }
 0x27a   :  { %273 = vmax.xlane.f32.xlu1 %v272_v57 }
 0x303   :  { %v271_v58 = vpop.xlane.xlu1 %270 }
 0x304   :  { %v275_v59 = vsub.f32 %v260_v54, %v271_v58 }
 0x306   :  { %v277_v60 = vmul.f32 1.442695, %v275_v59 }
 0x307   :  { %v274_v61 = vpop.xlane.xlu1 %273 }
 0x308   :  { %1238 = vpow2.f32 %v277_v60  ;;  %v276_v62 = vsub.f32 %v265_v55, %v274_v61 }
 0x30a   :  { %v279_v63 = vmul.f32 1.442695, %v276_v62 }
 0x30c   :  { %1240 = vpow2.f32 %v279_v63 }
 0x312   :  { %v1239_v0 = vpop.eup %1238 }
 0x313   :  { %v281_v1 = vsel %vm268_vm3, %v1239_v0, 0.0 }
 0x314   :  { %282 = vadd.xlane.f32.xlu0 %v281_v1 }
 0x316   :  { %v1241_v2 = vpop.eup %1240 }
 0x317   :  { %v284_v3 = vsel %vm268_vm3, %v1241_v2, 0.0 }
 0x318   :  { %285 = vadd.xlane.f32.xlu1 %v284_v3 }
 0x329   :  { %1209 = vrot.lane.b32.xlu1 %v1476_v47, %s1373_s29 }
 0x32d   :  { %374 = vrot.lane.b32.xlu1 %v1456_v40, %s1374_s30 }
 0x331   :  { %376 = vrot.lane.b32.xlu1 %v1460_v42, %s1374_s30 }
 0x3a1   :  { %v283_v4 = vpop.xlane.xlu0 %282 }
 0x3a2   :  { %1242 = vrcp.f32 %v283_v4 }
 0x3a5   :  { %v286_v5 = vpop.xlane.xlu1 %285 }
 0x3a6   :  { %1244 = vrcp.f32 %v286_v5 }
 0x3a9   :  { %v1210_v6 = vpop.permute.xlu1 %1209 }
 0x3aa   :  { %v1212_v7 = vunpack.i.h.bf16 %v1210_v6  ;;  %v1211_v8 = vunpack.i.l.bf16 %v1210_v6 }
 0x3ac   :  { %v1243_v9 = vpop.eup %1242  ;;  %v1152_v10 = vpack.c.bf16 %v1212_v7, %v1211_v8 }
 0x3ad   :  { %v289_v11 = vmul.f32 %v1243_v9, %v1239_v0  ;;  %v375_v14 = vpop.permute.xlu1 %374 }
 0x3ae   :  { %1154 = vmatprep.subr.msk.bf16.mxu1 %vm1464_vm2, %v1152_v10 }
 0x3af   :  { %1073 = vmatprep.mubr.msk.f32.mxu1 %vm268_vm3, %v289_v11 }
 0x3b0   :  { %v1245_v12 = vpop.eup %1244 }
 0x3b1   :  { %v290_v13 = vmul.f32 %v1245_v12, %v1241_v2  ;;  %v377_v15 = vpop.permute.xlu1 %376 }
 0x3b3   :  { %1074 = vmatmul.mubr.msk.f32.vlgmr.msra.gmra.mrb[2].mxu1 %vm268_vm3, %v290_v13 }
 0x3b4   :  { %1157 = vmatpush3.bf16.xpose.msk.msra.mxu1 %vm1464_vm2, %v1152_v10  ;;  %1080 = vmatprep.mubr.msk.f32.mxu1 %vm184_vm1, %v375_v14 }
 0x3bb   :  { %1081 = vmatmul.mubr.msk.f32.vlgmr.msra.gmra.mrb[4].mxu1 %vm184_vm1, %v377_v15 }
 0x48e   :  { %v1082_v16 = vpop.f32.mrb[4].mxu1 }
 0x48f   :  { %v462_v17 = vadd.f32 %v1082_v16, %v1486_v52  ;;  %v456_v18 = vpop.f32.mrb[5].mxu1 }
 0x490   :  { %v457_v19 = vadd.f32 %v456_v18, %v1484_v50 }
 0x491   :  { %v468_v20 = vsel %vm268_vm3, %v462_v17, -inf }
 0x492   :  { %469 = vmax.xlane.f32.xlu0 %v468_v20  ;;  %v465_v21 = vsel %vm268_vm3, %v457_v19, -inf }
 0x493   :  { %466 = vmax.xlane.f32.xlu1 %v465_v21 }
 0x4a4   :  { %1224 = vrot.lane.b32.xlu1 %v1476_v47, %s1375_s5 }
 0x4a8   :  { %1214 = vrot.lane.b32.xlu0 %v1468_v45, %s1372_s2 }
 0x4ac   :  { %1219 = vrot.lane.b32.xlu0 %v1476_v47, %s1376_s6 }
 0x4b0   :  { %578 = vrot.lane.b32.xlu0 %v1456_v40, %s1377_s7 }
 0x4b4   :  { %580 = vrot.lane.b32.xlu0 %v1460_v42, %s1377_s7 }
 0x51f   :  { %v470_v22 = vpop.xlane.xlu0 %469 }
 0x520   :  { %v472_v23 = vsub.f32 %v462_v17, %v470_v22  ;;  %v467_v24 = vpop.xlane.xlu1 %466 }
 0x521   :  { %v471_v25 = vsub.f32 %v457_v19, %v467_v24 }
 0x522   :  { %v475_v26 = vmul.f32 1.442695, %v472_v23 }
 0x523   :  { %v473_v27 = vmul.f32 1.442695, %v471_v25  ;;  %v1215_v28 = vpop.permute.xlu0 %1214 }
 0x524   :  { %1246 = vpow2.f32 %v475_v26  ;;  %v1217_v29 = vunpack.i.h.bf16 %v1215_v28  ;;  %v1216_v30 = vunpack.i.l.bf16 %v1215_v28  ;;  %v1225_v31 = vpop.permute.xlu1 %1224 }
 0x525   :  { %v1227_v32 = vunpack.i.h.bf16 %v1225_v31  ;;  %v1226_v33 = vunpack.i.l.bf16 %v1225_v31  ;;  %1248 = vpow2.f32 %v473_v27 }
 0x526   :  { %v1158_v34 = vpack.c.bf16 %v1217_v29, %v1216_v30 }
 0x527   :  { %v1172_v35 = vpack.c.bf16 %v1227_v32, %v1226_v33  ;;  %v1220_v36 = vpop.permute.xlu0 %1219 }
 0x528   :  { %v1222_v37 = vunpack.i.h.bf16 %v1220_v36  ;;  %v1221_v38 = vunpack.i.l.bf16 %v1220_v36  ;;  %1159 = vmatprep.subr.bf16.mxu1 %v1158_v34 }
 0x529   :  { %1161 = vmatpush3.bf16.msra.mxu1 %v1158_v34 }
 0x52a   :  { %v1162_v39 = vpack.c.bf16 %v1222_v37, %v1221_v38  ;;  %1174 = vmatprep.subr.msk.bf16.mxu1 %vm1464_vm2, %v1172_v35 }
 0x52b   :  { %v579_v41 = vpop.permute.xlu0 %578 }
 0x52c   :  { %1164 = vmatprep.subr.msk.bf16.mxu0 %vm1464_vm2, %v1162_v39  ;;  %1094 = vmatprep.mubr.msk.f32.mxu0 %vm184_vm1, %v579_v41 }
 0x52d   :  { %1167 = vmatpush3.bf16.xpose.msk.msra.mxu0 %vm1464_vm2, %v1162_v39 }
 0x52e   :  { %v1247_v44 = vpop.eup %1246 }
 0x52f   :  { %v480_v46 = vsel %vm268_vm3, %v1247_v44, 0.0  ;;  %v1249_v47 = vpop.eup %1248  ;;  %v581_v48 = vpop.permute.xlu0 %580 }
 0x530   :  { %481 = vadd.xlane.f32.xlu0 %v480_v46  ;;  %v477_v49 = vsel %vm268_vm3, %v1249_v47, 0.0 }
 0x534   :  { %1095 = vmatmul.mubr.msk.f32.vlgmr.msra.gmra.mrb[4].mxu0 %vm184_vm1, %v581_v48  ;;  %478 = vadd.xlane.f32.xlu0 %v477_v49  ;;  %v1005_v48 = vld [vmem:[%s1578_s3] ss:$0 sm:$0xff] }
 0x54a   :  { %780 = vrot.lane.b32.xlu0 %v1456_v40, %s1378_s8 }
 0x54e   :  { %782 = vrot.lane.b32.xlu0 %v1460_v42, %s1378_s8 }
 0x5bd   :  { %v482_v51 = vpop.xlane.xlu0 %481 }
 0x5be   :  { %1250 = vrcp.f32 %v482_v51 }
 0x5c1   :  { %v479_v53 = vpop.xlane.xlu0 %478 }
 0x5c2   :  { %1252 = vrcp.f32 %v479_v53 }
 0x5c5   :  { %v781_v58 = vpop.permute.xlu0 %780 }
 0x5c8   :  { %v1251_v54 = vpop.eup %1250 }
 0x5c9   :  { %v486_v57 = vmul.f32 %v1251_v54, %v1247_v44  ;;  %v783_v40 = vpop.permute.xlu0 %782 }
 0x5cc   :  { %v1253_v55 = vpop.eup %1252 }
 0x5cd   :  { %v485_v56 = vmul.f32 %v1253_v55, %v1249_v47 }
 0x5cf   :  { %1087 = vmatprep.mubr.msk.f32.mxu1 %vm268_vm3, %v485_v56 }
 0x5d0   :  { %1088 = vmatmul.mubr.msk.f32.vlgmr.msra.gmra.mrb[2].mxu1 %vm268_vm3, %v486_v57 }
 0x5d1   :  { %1177 = vmatpush3.bf16.xpose.msk.msra.mxu1 %vm1464_vm2, %v1172_v35  ;;  %1108 = vmatprep.mubr.msk.f32.mxu1 %vm184_vm1, %v781_v58 }
 0x5d8   :  { %1109 = vmatmul.mubr.msk.f32.vlgmr.msra.gmra.mrb[6].mxu1 %vm184_vm1, %v783_v40 }
 0x607   :  { %v1096_v42 = vpop.f32.mrb[4].mxu0 }
 0x608   :  { %v666_v59 = vadd.f32 %v1096_v42, %v1486_v52  ;;  %v660_v60 = vpop.f32.mrb[5].mxu0 }
 0x609   :  { %v661_v61 = vadd.f32 %v660_v60, %v1484_v50 }
 0x60a   :  { %v672_v62 = vsel %vm268_vm3, %v666_v59, -inf }
 0x60b   :  { %673 = vmax.xlane.f32.xlu0 %v672_v62  ;;  %v669_v63 = vsel %vm268_vm3, %v661_v61, -inf }
 0x60c   :  { %670 = vmax.xlane.f32.xlu1 %v669_v63 }
 0x698   :  { %v674_v0 = vpop.xlane.xlu0 %673 }
 0x699   :  { %v671_v43 = vpop.xlane.xlu1 %670  ;;  %v676_v1 = vsub.f32 %v666_v59, %v674_v0 }
 0x69a   :  { %v675_v2 = vsub.f32 %v661_v61, %v671_v43 }
 0x69b   :  { %v679_v3 = vmul.f32 1.442695, %v676_v1 }
 0x69c   :  { %v677_v4 = vmul.f32 1.442695, %v675_v2 }
 0x69d   :  { %1254 = vpow2.f32 %v679_v3 }
 0x69e   :  { %1256 = vpow2.f32 %v677_v4 }
 0x6a3   :  { %v1537_v5 = vpop.f32.mrb[2].mxu1 }
 0x6a4   :  { %v1539_v6 = vpop.f32.mrb[3].mxu1  ;;  %v1182_v49 = vadd.f32 %v1537_v5, %v1005_v48 }
 0x6a5   :  { %v1185_v51 = vadd.f32 %v1005_v48, %v1539_v6 }
 0x6a7   :  { %v1255_v12 = vpop.eup %1254 }
 0x6a8   :  { %v1257_v14 = vpop.eup %1256  ;;  %v684_v15 = vsel %vm268_vm3, %v1255_v12, 0.0 }
 0x6a9   :  { %v681_v16 = vsel %vm268_vm3, %v1257_v14, 0.0 }
 0x6ab   :  { %v1110_v7 = vpop.f32.mrb[6].mxu1 }
 0x6ac   :  { %v868_v8 = vadd.f32 %v1110_v7, %v1486_v52  ;;  %v862_v9 = vpop.f32.mrb[7].mxu1 }
 0x6ad   :  { %v863_v10 = vadd.f32 %v862_v9, %v1484_v50 }
 0x6ae   :  { %v874_v11 = vsel %vm268_vm3, %v868_v8, -inf }
 0x6af   :  { %875 = vmax.xlane.f32.xlu1 %v874_v11  ;;  %v871_v13 = vsel %vm268_vm3, %v863_v10, -inf }
 0x6b0   :  { %872 = vmax.xlane.f32.xlu0 %v871_v13 }
 0x6b3   :  { %685 = vadd.xlane.f32.xlu1 %v684_v15 }
 0x6b4   :  { %682 = vadd.xlane.f32.xlu0 %v681_v16 }
 0x73c   :  { %v876_v17 = vpop.xlane.xlu1 %875 }
 0x73d   :  { %v878_v18 = vsub.f32 %v868_v8, %v876_v17  ;;  %v873_v52 = vpop.xlane.xlu0 %872 }
 0x73e   :  { %v877_v19 = vsub.f32 %v863_v10, %v873_v52 }
 0x73f   :  { %v881_v20 = vmul.f32 1.442695, %v878_v18 }
 0x740   :  { %v879_v50 = vmul.f32 1.442695, %v877_v19  ;;  %v686_v28 = vpop.xlane.xlu1 %685 }
 0x741   :  { %1258 = vpow2.f32 %v881_v20  ;;  %v683_v21 = vpop.xlane.xlu0 %682 }
 0x742   :  { %1260 = vpow2.f32 %v879_v50 }
 0x743   :  { %1262 = vrcp.f32 %v683_v21 }
 0x744   :  { %1264 = vrcp.f32 %v686_v28 }
 0x74b   :  { %v1259_v22 = vpop.eup %1258 }
 0x74c   :  { %v1261_v23 = vpop.eup %1260  ;;  %v886_v24 = vsel %vm268_vm3, %v1259_v22, 0.0 }
 0x74d   :  { %887 = vadd.xlane.f32.xlu1 %v886_v24  ;;  %v883_v25 = vsel %vm268_vm3, %v1261_v23, 0.0  ;;  %v1263_v26 = vpop.eup %1262 }
 0x74e   :  { %884 = vadd.xlane.f32.xlu0 %v883_v25  ;;  %v689_v27 = vmul.f32 %v1263_v26, %v1257_v14  ;;  %v1265_v39 = vpop.eup %1264 }
 0x74f   :  { %v690_v44 = vmul.f32 %v1265_v39, %v1255_v12 }
 0x750   :  { %1101 = vmatprep.mubr.msk.f32.mxu0 %vm268_vm3, %v689_v27 }
 0x75e   :  { %1234 = vrot.lane.b32.xlu1 %v1468_v45, %s1379_s9 }
 0x764   :  { %1229 = vrot.lane.b32.xlu0 %v1468_v45, %s1380_s10 }
 0x7da   :  { %v888_v29 = vpop.xlane.xlu1 %887 }
 0x7db   :  { %1266 = vrcp.f32 %v888_v29  ;;  %v885_v30 = vpop.xlane.xlu0 %884 }
 0x7dc   :  { %1268 = vrcp.f32 %v885_v30 }
 0x7de   :  { %v1235_v31 = vpop.permute.xlu1 %1234 }
 0x7df   :  { %v1237_v32 = vunpack.i.h.bf16 %v1235_v31  ;;  %v1236_v33 = vunpack.i.l.bf16 %v1235_v31  ;;  %v1230_v34 = vpop.permute.xlu0 %1229 }
 0x7e0   :  { %v1232_v35 = vunpack.i.h.bf16 %v1230_v34  ;;  %v1231_v36 = vunpack.i.l.bf16 %v1230_v34 }
 0x7e1   :  { %v1178_v37 = vpack.c.bf16 %v1237_v32, %v1236_v33 }
 0x7e2   :  { %v1168_v38 = vpack.c.bf16 %v1232_v35, %v1231_v36 }
 0x7e3   :  { %1179 = vmatprep.subr.bf16.mxu1 %v1178_v37 }
 0x7e4   :  { %1169 = vmatprep.subr.bf16.mxu0 %v1168_v38  ;;  %1181 = vmatpush3.bf16.msra.mxu1 %v1178_v37 }
 0x7e5   :  { %v1267_v41 = vpop.eup %1266  ;;  %1171 = vmatpush3.bf16.msra.mxu0 %v1168_v38 }
 0x7e6   :  { %v1269_v45 = vpop.eup %1268  ;;  %v892_v47 = vmul.f32 %v1267_v41, %v1259_v22 }
 0x7e7   :  { %v891_v46 = vmul.f32 %v1269_v45, %v1261_v23 }
 0x7e8   :  { %1102 = vmatmul.mubr.msk.f32.vlgmr.msra.gmra.mrb[6].mxu0 %vm268_vm3, %v690_v44 }
 0x7e9   :  { %1115 = vmatprep.mubr.msk.f32.mxu1 %vm268_vm3, %v891_v46 }
 0x7ea   :  { %1116 = vmatmul.mubr.msk.f32.vlgmr.msra.gmra.mrb[8].mxu1 %vm268_vm3, %v892_v47 }
 0x8bb   :  { %v1103_v53 = vpop.f32.mrb[6].mxu0 }
 0x8bc   :  { %v1183_v54 = vadd.f32 %v1182_v49, %v1103_v53  ;;  %v769_v55 = vpop.f32.mrb[7].mxu0 }
 0x8bd   :  { %v1186_v56 = vadd.f32 %v1185_v51, %v769_v55  ;;  %v1117_v57 = vpop.f32.mrb[8].mxu1 }
 0x8be   :  { %v1184_v58 = vadd.f32 %v1183_v54, %v1117_v57  ;;  %v971_v40 = vpop.f32.mrb[9].mxu1 }
 0x8bf   :  { %v1187_v42 = vadd.f32 %v1186_v56, %v971_v40 }
 0x8c0   :  { %984 = vst.msk [vmem:[#allocation8 + $0x8] sm:$0xff] %vm982_vm4, %v1184_v58 }
 0x8c1   :  { %983 = vst.msk [vmem:[#allocation8] sm:$0xff] %vm982_vm4, %v1187_v42 }
 0x8c2   :  { %1347 = shalt.err (!%p1344_p0)
}
 0x8c3   :  { %s1348_s16 = scalar_lea.hbm %s1579_s4, 256 }
 0x8c4   :  { %p1349_p1 = scmp.ne.s32.totalorder %s1579_s4, %s1348_s16  ;;  %p1352_p2 = scmp.lt.u32.totalorder %s1348_s16, %s1579_s4 }
 0x8c6   :  { %p1354_p3 = pnand %p1352_p2, %p1349_p1 }
 0x8c8   :  { %1357 = shalt.err (!%p1354_p3)
}
 0x8c9   :  { %996 = dma.vmem_to_hbm [thread:$0]  %s991_s13, 256, %s1579_s4, [#allocation4], %s1366_s27, %s1366_s27, %s1367_s28  }
 0x8ca   :  { %1362 = dma.done.wait [#allocation4], 256  }
 0x8cb   :  { %1363 = vsyncadd [#allocation4], 4294967040 }
 0x8cc   :  { %1000 = vsyncpa [#allocation3], 1 }
 0x8cd   :  { %1001 = vsyncpa [#allocation6], 1 }
 0x8ce   :  { %1002 = vsyncpa [#allocation4], 1 }

</bundles_post_ra>
